<compile_context>
chip_gen: v7x
topology: tpu7x:2x2x1
jax: 0.10.0
libtpu: 0.0.40
codegen_flags: <defaults>
</compile_context>

<pallas_src>
import jax
import jax.numpy as jnp
from jax.experimental import pallas as pl
from jax.experimental.pallas import tpu as pltpu


# ----------------------------------------------------------------------------
# Pallas kernels
# ----------------------------------------------------------------------------
def _bigru_encoder_kernel(gx_ref, whh_ref, bhh_ref, hfin_ref, h_scr):
    """Fused bidirectional GRU encoder.

    grid = (2, T): axis 0 = direction (parallel), axis 1 = time (arbitrary).
    gx_ref : (3, B, H) hoisted x@W_ih+b_ih gates for this (dir, time).
    whh_ref: (3, H, H) gate-split hidden-to-hidden weights for this direction.
    bhh_ref: (3, 1, H) gate-split hidden biases.
    hfin_ref: (B, H) final hidden for this direction (written at last step).
    """
    t = pl.program_id(1)
    nt = pl.num_programs(1)

    @pl.when(t == 0)
    def _():
        h_scr[...] = jnp.zeros_like(h_scr)

    h = h_scr[...]                                   # (B, H)

    gh_r = jnp.dot(h, whh_ref[0], preferred_element_type=jnp.float32) + bhh_ref[0]
    gh_z = jnp.dot(h, whh_ref[1], preferred_element_type=jnp.float32) + bhh_ref[1]
    gh_n = jnp.dot(h, whh_ref[2], preferred_element_type=jnp.float32) + bhh_ref[2]

    r = jax.nn.sigmoid(gx_ref[0] + gh_r)
    zg = jax.nn.sigmoid(gx_ref[1] + gh_z)
    n = jnp.tanh(gx_ref[2] + r * gh_n)               # r * (h@W_hn + b_hn)  (PyTorch order)
    h_new = (1.0 - zg) * n + zg * h

    h_scr[...] = h_new

    @pl.when(t == nt - 1)
    def _():
        hfin_ref[...] = h_new


def bigru_encoder(gx_enc, w_hh, b_hh):
    """gx_enc: (2, T, 3, B, H), w_hh: (2, 3, H, H), b_hh: (2, 3, 1, H) -> (2, B, H)."""
    _, T, _, B, H = gx_enc.shape
    return pl.pallas_call(
        _bigru_encoder_kernel,
        out_shape=jax.ShapeDtypeStruct((2, B, H), jnp.float32),
        grid=(2, T),
        in_specs=[
            # forward direction reads time t, backward direction reads T-1-t
            pl.BlockSpec((None, None, 3, B, H),
                         lambda d, t: (d, (1 - d) * t + d * (T - 1 - t), 0, 0, 0)),
            pl.BlockSpec((None, 3, H, H), lambda d, t: (d, 0, 0, 0)),
            pl.BlockSpec((None, 3, 1, H), lambda d, t: (d, 0, 0, 0)),
        ],
        out_specs=pl.BlockSpec((None, B, H), lambda d, t: (d, 0, 0)),
        scratch_shapes=[pltpu.VMEM((B, H), jnp.float32)],
        compiler_params=pltpu.CompilerParams(
            dimension_semantics=("parallel", "arbitrary")),
    )(gx_enc, w_hh, b_hh)


def _gru_decoder_kernel(gx_ref, whh_ref, bhh_ref, out_ref, h_scr):
    """Decoder GRU. grid=(T,); full (T,B,H) output is VMEM-resident, written at end."""
    t = pl.program_id(0)

    @pl.when(t == 0)
    def _():
        h_scr[...] = jnp.zeros_like(h_scr)

    h = h_scr[...]                                   # (B, H)

    gh_r = jnp.dot(h, whh_ref[0], preferred_element_type=jnp.float32) + bhh_ref[0]
    gh_z = jnp.dot(h, whh_ref[1], preferred_element_type=jnp.float32) + bhh_ref[1]
    gh_n = jnp.dot(h, whh_ref[2], preferred_element_type=jnp.float32) + bhh_ref[2]

    r = jax.nn.sigmoid(gx_ref[0] + gh_r)
    zg = jax.nn.sigmoid(gx_ref[1] + gh_z)
    n = jnp.tanh(gx_ref[2] + r * gh_n)
    h_new = (1.0 - zg) * n + zg * h

    h_scr[...] = h_new
    out_ref[pl.ds(t, 1), :, :] = h_new[None, :, :]


def gru_decoder(gx_dec, w_hh, b_hh):
    """gx_dec: (T, 3, B, H), w_hh: (3, H, H), b_hh: (3, 1, H) -> (T, B, H)."""
    T, _, B, H = gx_dec.shape
    return pl.pallas_call(
        _gru_decoder_kernel,
        out_shape=jax.ShapeDtypeStruct((T, B, H), jnp.float32),
        grid=(T,),
        in_specs=[
            pl.BlockSpec((None, 3, B, H), lambda t: (t, 0, 0, 0)),
            pl.BlockSpec((3, H, H), lambda t: (0, 0, 0)),
            pl.BlockSpec((3, 1, H), lambda t: (0, 0, 0)),
        ],
        # TODO(synk): for very long T, chunk the output into (C,B,H) blocks
        # instead of keeping all T steps resident in VMEM.
        out_specs=pl.BlockSpec((T, B, H), lambda t: (0, 0, 0)),
        scratch_shapes=[pltpu.VMEM((B, H), jnp.float32)],
        compiler_params=pltpu.CompilerParams(
            dimension_semantics=("arbitrary",)),
    )(gx_dec, w_hh, b_hh)


def _linear_kernel(x_ref, w_ref, b_ref, o_ref):
    o_ref[...] = (
        jnp.dot(x_ref[...], w_ref[...], preferred_element_type=jnp.float32)
        + b_ref[...]
    )


def linear(x, w, b, *, tm=256, tn=512):
    """Tiled x @ W + b.  x: (N, Din), w: (Din, Dout), b: (Dout,) -> (N, Dout)."""
    N, Din = x.shape
    Dout = w.shape[1]
    tm = tm if (N % tm == 0) else N          # tiles are (8,128)-aligned or full-dim
    tn = tn if (Dout % tn == 0) else Dout
    return pl.pallas_call(
        _linear_kernel,
        out_shape=jax.ShapeDtypeStruct((N, Dout), jnp.float32),
        grid=(N // tm, Dout // tn),
        in_specs=[
            pl.BlockSpec((tm, Din), lambda i, j: (i, 0)),
            pl.BlockSpec((Din, tn), lambda i, j: (0, j)),
            pl.BlockSpec((1, tn), lambda i, j: (0, j)),
        ],
        out_specs=pl.BlockSpec((tm, tn), lambda i, j: (i, j)),
        compiler_params=pltpu.CompilerParams(
            dimension_semantics=("parallel", "parallel"),
            vmem_limit_bytes=48 * 1024 * 1024),
    )(x, w, b.reshape(1, -1))


# ----------------------------------------------------------------------------
# VAE forward (mirrors VAE.forward)
# ----------------------------------------------------------------------------
@jax.jit
def vae_forward(params, input_ids, noise_key):
    # input_ids: (T, B) int32 (batch_first=False, like the PyTorch module)
    T, B = input_ids.shape
    emb = jnp.take(params["embedding"], input_ids, axis=0)          # (T, B, E)
    E = emb.shape[-1]
    H = params["dec"]["w_hh"].shape[-1]
    emb_flat = emb.reshape(T * B, E)

    # ----- bidirectional GRU encoder (nlayers=1) -----
    # Hoisted input->hidden projection for BOTH directions in one big matmul.
    gx_enc = linear(emb_flat, params["enc"]["w_ih"], params["enc"]["b_ih"])  # (T*B, 2*3*H)
    gx_enc = gx_enc.reshape(T, B, 2, 3, H).transpose(2, 0, 3, 1, 4)          # (2, T, 3, B, H)

    h_fin = bigru_encoder(gx_enc, params["enc"]["w_hh"], params["enc"]["b_hh"])  # (2, B, H)
    h = jnp.concatenate([h_fin[0], h_fin[1]], axis=1)               # (B, 2H) == cat(h[-2], h[-1])

    # merged mu / logvar projection (one call, concatenated weights)
    mu_lv = linear(h, params["w_mulv"], params["b_mulv"])           # (B, 2Z)
    Z = mu_lv.shape[1] // 2
    mu = mu_lv[:, :Z]
    logvar = mu_lv[:, Z:]

    z_std = jnp.exp(0.5 * logvar)
    pre_z = jax.random.normal(noise_key, z_std.shape, dtype=z_std.dtype)
    z = pre_z * z_std + mu                                          # (B, Z)

    # ----- decoder -----
    init_de_hidden = linear(z, params["w_l2h"], params["b_l2h"])    # (B, E)
    dec_in = (emb + init_de_hidden[None, :, :]).reshape(T * B, E)   # broadcast over T
    gx_dec = linear(dec_in, params["dec"]["w_ih"], params["dec"]["b_ih"])    # (T*B, 3H)
    gx_dec = gx_dec.reshape(T, B, 3, H).transpose(0, 2, 1, 3)                # (T, 3, B, H)

    dec_out = gru_decoder(gx_dec, params["dec"]["w_hh"], params["dec"]["b_hh"])  # (T, B, H)

    logits = linear(dec_out.reshape(T * B, H), params["w_out"], params["b_out"])  # (T*B, V)
    logits = logits.reshape(T, B, -1)                               # (T, B, V)
    return mu, logvar, z, logits


# ----------------------------------------------------------------------------
# Deterministic parameter construction (gate-split / direction-stacked layout)
# ----------------------------------------------------------------------------
def make_params(key, vocab, emb, hid, lat):
    keys = iter(jax.random.split(key, 15))

    def rnd(shape):
        return 0.1 * jax.random.normal(next(keys), shape, jnp.float32)

    return {
        "embedding": rnd((vocab, emb)),
        "enc": {
            # columns laid out [dir0: r|z|n, dir1: r|z|n], each gate width H
            "w_ih": rnd((emb, 2 * 3 * hid)),
            "b_ih": rnd((2 * 3 * hid,)),
            "w_hh": rnd((2, 3, hid, hid)),
            "b_hh": rnd((2, 3, 1, hid)),
        },
        "dec": {
            "w_ih": rnd((emb, 3 * hid)),   # columns [r|z|n]
            "b_ih": rnd((3 * hid,)),
            "w_hh": rnd((3, hid, hid)),
            "b_hh": rnd((3, 1, hid)),
        },
        # merged hidden2mean / hidden2logv: columns [mu | logvar]
        "w_mulv": rnd((2 * hid, 2 * lat)),
        "b_mulv": rnd((2 * lat,)),
        "w_l2h": rnd((lat, emb)),
        "b_l2h": rnd((emb,)),
        "w_out": rnd((hid, vocab)),
        "b_out": rnd((vocab,)),
    }


if __name__ == "__main__":
    # small, forward-consistent shapes
    T, B = 8, 4            # seq_len, batch (time-major)
    VOCAB = 32             # vocab.size
    E, H, Z = 16, 32, 8    # dim_emb, dim_h, dim_z

    root = jax.random.PRNGKey(0)
    k_params, k_ids, k_noise = jax.random.split(root, 3)

    params = make_params(k_params, VOCAB, E, H, Z)
    input_ids = jax.random.randint(k_ids, (T, B), 0, VOCAB, dtype=jnp.int32)

    mu, logvar, z, logits = vae_forward(params, input_ids, k_noise)
    jax.block_until_ready((mu, logvar, z, logits))

    assert mu.shape == (B, Z)
    assert logvar.shape == (B, Z)
    assert z.shape == (B, Z)
    assert logits.shape == (T, B, VOCAB)
    assert all(bool(jnp.all(jnp.isfinite(a))) for a in (mu, logvar, z, logits))

    print("KERNEL_OK")
</pallas_src>

<mosaic_0001>
module attributes {stable_mosaic.version = 11 : i64} {
  func.func @_linear_kernel(%arg0: i32, %arg1: i32, %arg2: memref<4x64xf32, #tpu.memory_space<vmem>>, %arg3: memref<64x16xf32, #tpu.memory_space<vmem>>, %arg4: memref<1x16xf32, #tpu.memory_space<vmem>>, %arg5: memref<4x16xf32, #tpu.memory_space<vmem>>) attributes {dimension_semantics = [#tpu.dimension_semantics<parallel>, #tpu.dimension_semantics<parallel>], iteration_bounds = array<i64: 1, 1>, scalar_prefetch = 0 : i64, scratch_operands = 0 : i64, tpu.core_type = #tpu.core_type<tc>, window_params = [{transform_indices = @transform_0, window_bounds = array<i64: 4, 64>}, {transform_indices = @transform_1, window_bounds = array<i64: 64, 16>}, {transform_indices = @transform_2, window_bounds = array<i64: 1, 16>}, {transform_indices = @transform_3, window_bounds = array<i64: 4, 16>}]} {
    %c0 = arith.constant 0 : index
    %c0_0 = arith.constant 0 : index
    %0 = vector.load %arg2[%c0, %c0_0] : memref<4x64xf32, #tpu.memory_space<vmem>>, vector<4x64xf32>
    %c0_1 = arith.constant 0 : index
    %c0_2 = arith.constant 0 : index
    %1 = vector.load %arg3[%c0_1, %c0_2] : memref<64x16xf32, #tpu.memory_space<vmem>>, vector<64x16xf32>
    %cst = arith.constant dense<0.000000e+00> : vector<4x16xf32>
    %2 = tpu.matmul %0, %1, %cst {dimension_numbers = #tpu.dot_dimension_numbers<[1], [0], [0], [1], [0, 0, 1, 1], [], []>} : vector<4x64xf32>, vector<64x16xf32>, vector<4x16xf32> -> vector<4x16xf32>
    %c0_3 = arith.constant 0 : index
    %c0_4 = arith.constant 0 : index
    %3 = vector.load %arg4[%c0_3, %c0_4] : memref<1x16xf32, #tpu.memory_space<vmem>>, vector<1x16xf32>
    %4 = vector.broadcast %3 : vector<1x16xf32> to vector<4x16xf32>
    %5 = arith.addf %2, %4 : vector<4x16xf32>
    %c0_5 = arith.constant 0 : index
    %c0_6 = arith.constant 0 : index
    %6 = vector.load %arg5[%c0_5, %c0_6] : memref<4x16xf32, #tpu.memory_space<vmem>>, vector<4x16xf32>
    tpu.vector_store %arg5[%c0_5, %c0_6], %5 {strides = array<i32>} : memref<4x16xf32, #tpu.memory_space<vmem>>, vector<4x16xf32>,
    return
  }
  func.func @transform_0(%arg0: i32, %arg1: i32) -> (i32, i32) {
    %c0_i32 = arith.constant 0 : i32
    %c0_i32_0 = arith.constant 0 : i32
    return %arg0, %c0_i32 : i32, i32
  }
  func.func @transform_1(%arg0: i32, %arg1: i32) -> (i32, i32) {
    %c0_i32 = arith.constant 0 : i32
    %c0_i32_0 = arith.constant 0 : i32
    return %c0_i32, %arg1 : i32, i32
  }
  func.func @transform_2(%arg0: i32, %arg1: i32) -> (i32, i32) {
    %c0_i32 = arith.constant 0 : i32
    %c0_i32_0 = arith.constant 0 : i32
    return %c0_i32, %arg1 : i32, i32
  }
  func.func @transform_3(%arg0: i32, %arg1: i32) -> (i32, i32) {
    %c0_i32 = arith.constant 0 : i32
    return %arg0, %arg1 : i32, i32
  }
}

module attributes {stable_mosaic.version = 11 : i64} {
  func.func @_linear_kernel(%arg0: i32, %arg1: i32, %arg2: memref<32x16xf32, #tpu.memory_space<vmem>>, %arg3: memref<16x192xf32, #tpu.memory_space<vmem>>, %arg4: memref<1x192xf32, #tpu.memory_space<vmem>>, %arg5: memref<32x192xf32, #tpu.memory_space<vmem>>) attributes {dimension_semantics = [#tpu.dimension_semantics<parallel>, #tpu.dimension_semantics<parallel>], iteration_bounds = array<i64: 1, 1>, scalar_prefetch = 0 : i64, scratch_operands = 0 : i64, tpu.core_type = #tpu.core_type<tc>, window_params = [{transform_indices = @transform_0, window_bounds = array<i64: 32, 16>}, {transform_indices = @transform_1, window_bounds = array<i64: 16, 192>}, {transform_indices = @transform_2, window_bounds = array<i64: 1, 192>}, {transform_indices = @transform_3, window_bounds = array<i64: 32, 192>}]} {
    %c0 = arith.constant 0 : index
    %c0_0 = arith.constant 0 : index
    %0 = vector.load %arg2[%c0, %c0_0] : memref<32x16xf32, #tpu.memory_space<vmem>>, vector<32x16xf32>
    %c0_1 = arith.constant 0 : index
    %c0_2 = arith.constant 0 : index
    %1 = vector.load %arg3[%c0_1, %c0_2] : memref<16x192xf32, #tpu.memory_space<vmem>>, vector<16x192xf32>
    %cst = arith.constant dense<0.000000e+00> : vector<32x192xf32>
    %2 = tpu.matmul %0, %1, %cst {dimension_numbers = #tpu.dot_dimension_numbers<[1], [0], [0], [1], [0, 0, 1, 1], [], []>} : vector<32x16xf32>, vector<16x192xf32>, vector<32x192xf32> -> vector<32x192xf32>
    %c0_3 = arith.constant 0 : index
    %c0_4 = arith.constant 0 : index
    %3 = vector.load %arg4[%c0_3, %c0_4] : memref<1x192xf32, #tpu.memory_space<vmem>>, vector<1x192xf32>
    %4 = vector.broadcast %3 : vector<1x192xf32> to vector<32x192xf32>
    %5 = arith.addf %2, %4 : vector<32x192xf32>
    %c0_5 = arith.constant 0 : index
    %c0_6 = arith.constant 0 : index
    %6 = vector.load %arg5[%c0_5, %c0_6] : memref<32x192xf32, #tpu.memory_space<vmem>>, vector<32x192xf32>
    tpu.vector_store %arg5[%c0_5, %c0_6], %5 {strides = array<i32>} : memref<32x192xf32, #tpu.memory_space<vmem>>, vector<32x192xf32>,
    return
  }
  func.func @transform_0(%arg0: i32, %arg1: i32) -> (i32, i32) {
    %c0_i32 = arith.constant 0 : i32
    %c0_i32_0 = arith.constant 0 : i32
    return %arg0, %c0_i32 : i32, i32
  }
  func.func @transform_1(%arg0: i32, %arg1: i32) -> (i32, i32) {
    %c0_i32 = arith.constant 0 : i32
    %c0_i32_0 = arith.constant 0 : i32
    return %c0_i32, %arg1 : i32, i32
  }
  func.func @transform_2(%arg0: i32, %arg1: i32) -> (i32, i32) {
    %c0_i32 = arith.constant 0 : i32
    %c0_i32_0 = arith.constant 0 : i32
    return %c0_i32, %arg1 : i32, i32
  }
  func.func @transform_3(%arg0: i32, %arg1: i32) -> (i32, i32) {
    %c0_i32 = arith.constant 0 : i32
    return %arg0, %arg1 : i32, i32
  }
}

module attributes {stable_mosaic.version = 11 : i64} {
  func.func @_bigru_encoder_kernel(%arg0: i32, %arg1: i32, %arg2: memref<1x1x3x4x32xf32, #tpu.memory_space<vmem>>, %arg3: memref<1x3x32x32xf32, #tpu.memory_space<vmem>>, %arg4: memref<1x3x1x32xf32, #tpu.memory_space<vmem>>, %arg5: memref<1x4x32xf32, #tpu.memory_space<vmem>>, %arg6: memref<4x32xf32, #tpu.memory_space<vmem>>) attributes {dimension_semantics = [#tpu.dimension_semantics<parallel>, #tpu.dimension_semantics<arbitrary>], iteration_bounds = array<i64: 2, 8>, scalar_prefetch = 0 : i64, scratch_operands = 1 : i64, tpu.core_type = #tpu.core_type<tc>, window_params = [{transform_indices = @transform_0, window_bounds = array<i64: 1, 1, 3, 4, 32>}, {transform_indices = @transform_1, window_bounds = array<i64: 1, 3, 32, 32>}, {transform_indices = @transform_2, window_bounds = array<i64: 1, 3, 1, 32>}, {transform_indices = @transform_3, window_bounds = array<i64: 1, 4, 32>}]} {
    %c0_i32 = arith.constant 0 : i32
    %0 = arith.cmpi eq, %arg1, %c0_i32 : i32
    %1 = arith.extui %0 : i1 to i32
    %c0_i32_0 = arith.constant 0 : i32
    %2 = arith.cmpi ne, %1, %c0_i32_0 : i32
    scf.if %2 {
      %cst_47 = arith.constant 0.000000e+00 : f32
      %55 = vector.broadcast %cst_47 : f32 to vector<4x32xf32>
      %c0_48 = arith.constant 0 : index
      %c0_49 = arith.constant 0 : index
      %56 = vector.load %arg6[%c0_48, %c0_49] : memref<4x32xf32, #tpu.memory_space<vmem>>, vector<4x32xf32>
      tpu.vector_store %arg6[%c0_48, %c0_49], %55 {strides = array<i32>} : memref<4x32xf32, #tpu.memory_space<vmem>>, vector<4x32xf32>,
    } else {
    }
    %c0 = arith.constant 0 : index
    %c0_1 = arith.constant 0 : index
    %3 = vector.load %arg6[%c0, %c0_1] : memref<4x32xf32, #tpu.memory_space<vmem>>, vector<4x32xf32>
    %c0_2 = arith.constant 0 : index
    %c0_3 = arith.constant 0 : index
    %c0_4 = arith.constant 0 : index
    %c0_5 = arith.constant 0 : index
    %4 = vector.load %arg3[%c0_2, %c0_3, %c0_4, %c0_5] : memref<1x3x32x32xf32, #tpu.memory_space<vmem>>, vector<1x1x32x32xf32>
    %5 = vector.shape_cast %4 : vector<1x1x32x32xf32> to vector<32x32xf32>
    %cst = arith.constant dense<0.000000e+00> : vector<4x32xf32>
    %6 = tpu.matmul %3, %5, %cst {dimension_numbers = #tpu.dot_dimension_numbers<[1], [0], [0], [1], [0, 0, 1, 1], [], []>} : vector<4x32xf32>, vector<32x32xf32>, vector<4x32xf32> -> vector<4x32xf32>
    %c0_6 = arith.constant 0 : index
    %c0_7 = arith.constant 0 : index
    %c0_8 = arith.constant 0 : index
    %c0_9 = arith.constant 0 : index
    %7 = vector.load %arg4[%c0_6, %c0_7, %c0_8, %c0_9] : memref<1x3x1x32xf32, #tpu.memory_space<vmem>>, vector<1x1x1x32xf32>
    %8 = vector.shape_cast %7 : vector<1x1x1x32xf32> to vector<1x32xf32>
    %9 = vector.broadcast %8 : vector<1x32xf32> to vector<4x32xf32>
    %10 = arith.addf %6, %9 : vector<4x32xf32>
    %c0_10 = arith.constant 0 : index
    %c1 = arith.constant 1 : index
    %c0_11 = arith.constant 0 : index
    %c0_12 = arith.constant 0 : index
    %11 = vector.load %arg3[%c0_10, %c1, %c0_11, %c0_12] : memref<1x3x32x32xf32, #tpu.memory_space<vmem>>, vector<1x1x32x32xf32>
    %12 = vector.shape_cast %11 : vector<1x1x32x32xf32> to vector<32x32xf32>
    %cst_13 = arith.constant dense<0.000000e+00> : vector<4x32xf32>
    %13 = tpu.matmul %3, %12, %cst_13 {dimension_numbers = #tpu.dot_dimension_numbers<[1], [0], [0], [1], [0, 0, 1, 1], [], []>} : vector<4x32xf32>, vector<32x32xf32>, vector<4x32xf32> -> vector<4x32xf32>
    %c0_14 = arith.constant 0 : index
    %c1_15 = arith.constant 1 : index
    %c0_16 = arith.constant 0 : index
    %c0_17 = arith.constant 0 : index
    %14 = vector.load %arg4[%c0_14, %c1_15, %c0_16, %c0_17] : memref<1x3x1x32xf32, #tpu.memory_space<vmem>>, vector<1x1x1x32xf32>
    %15 = vector.shape_cast %14 : vector<1x1x1x32xf32> to vector<1x32xf32>
    %16 = vector.broadcast %15 : vector<1x32xf32> to vector<4x32xf32>
    %17 = arith.addf %13, %16 : vector<4x32xf32>
    %c0_18 = arith.constant 0 : index
    %c2 = arith.constant 2 : index
    %c0_19 = arith.constant 0 : index
    %c0_20 = arith.constant 0 : index
    %18 = vector.load %arg3[%c0_18, %c2, %c0_19, %c0_20] : memref<1x3x32x32xf32, #tpu.memory_space<vmem>>, vector<1x1x32x32xf32>
    %19 = vector.shape_cast %18 : vector<1x1x32x32xf32> to vector<32x32xf32>
    %cst_21 = arith.constant dense<0.000000e+00> : vector<4x32xf32>
    %20 = tpu.matmul %3, %19, %cst_21 {dimension_numbers = #tpu.dot_dimension_numbers<[1], [0], [0], [1], [0, 0, 1, 1], [], []>} : vector<4x32xf32>, vector<32x32xf32>, vector<4x32xf32> -> vector<4x32xf32>
    %c0_22 = arith.constant 0 : index
    %c2_23 = arith.constant 2 : index
    %c0_24 = arith.constant 0 : index
    %c0_25 = arith.constant 0 : index
    %21 = vector.load %arg4[%c0_22, %c2_23, %c0_24, %c0_25] : memref<1x3x1x32xf32, #tpu.memory_space<vmem>>, vector<1x1x1x32xf32>
    %22 = vector.shape_cast %21 : vector<1x1x1x32xf32> to vector<1x32xf32>
    %23 = vector.broadcast %22 : vector<1x32xf32> to vector<4x32xf32>
    %24 = arith.addf %20, %23 : vector<4x32xf32>
    %c0_26 = arith.constant 0 : index
    %c0_27 = arith.constant 0 : index
    %c0_28 = arith.constant 0 : index
    %c0_29 = arith.constant 0 : index
    %c0_30 = arith.constant 0 : index
    %25 = vector.load %arg2[%c0_26, %c0_27, %c0_28, %c0_29, %c0_30] : memref<1x1x3x4x32xf32, #tpu.memory_space<vmem>>, vector<1x1x1x4x32xf32>
    %26 = vector.shape_cast %25 : vector<1x1x1x4x32xf32> to vector<4x32xf32>
    %27 = arith.addf %26, %10 : vector<4x32xf32>
    %28 = arith.negf %27 : vector<4x32xf32>
    %29 = math.exp %28 : vector<4x32xf32>
    %cst_31 = arith.constant 1.000000e+00 : f32
    %30 = vector.broadcast %cst_31 : f32 to vector<4x32xf32>
    %31 = arith.addf %30, %29 : vector<4x32xf32>
    %32 = arith.divf %30, %31 : vector<4x32xf32>
    %c0_32 = arith.constant 0 : index
    %c0_33 = arith.constant 0 : index
    %c1_34 = arith.constant 1 : index
    %c0_35 = arith.constant 0 : index
    %c0_36 = arith.constant 0 : index
    %33 = vector.load %arg2[%c0_32, %c0_33, %c1_34, %c0_35, %c0_36] : memref<1x1x3x4x32xf32, #tpu.memory_space<vmem>>, vector<1x1x1x4x32xf32>
    %34 = vector.shape_cast %33 : vector<1x1x1x4x32xf32> to vector<4x32xf32>
    %35 = arith.addf %34, %17 : vector<4x32xf32>
    %36 = arith.negf %35 : vector<4x32xf32>
    %37 = math.exp %36 : vector<4x32xf32>
    %cst_37 = arith.constant 1.000000e+00 : f32
    %38 = vector.broadcast %cst_37 : f32 to vector<4x32xf32>
    %39 = arith.addf %38, %37 : vector<4x32xf32>
    %40 = arith.divf %38, %39 : vector<4x32xf32>
    %c0_38 = arith.constant 0 : index
    %c0_39 = arith.constant 0 : index
    %c2_40 = arith.constant 2 : index
    %c0_41 = arith.constant 0 : index
    %c0_42 = arith.constant 0 : index
    %41 = vector.load %arg2[%c0_38, %c0_39, %c2_40, %c0_41, %c0_42] : memref<1x1x3x4x32xf32, #tpu.memory_space<vmem>>, vector<1x1x1x4x32xf32>
    %42 = vector.shape_cast %41 : vector<1x1x1x4x32xf32> to vector<4x32xf32>
    %43 = arith.mulf %32, %24 : vector<4x32xf32>
    %44 = arith.addf %42, %43 : vector<4x32xf32>
    %45 = math.tanh %44 : vector<4x32xf32>
    %cst_43 = arith.constant 1.000000e+00 : f32
    %46 = vector.broadcast %cst_43 : f32 to vector<4x32xf32>
    %47 = arith.subf %46, %40 : vector<4x32xf32>
    %48 = arith.mulf %47, %45 : vector<4x32xf32>
    %49 = arith.mulf %40, %3 : vector<4x32xf32>
    %50 = arith.addf %48, %49 : vector<4x32xf32>
    %c0_44 = arith.constant 0 : index
    %c0_45 = arith.constant 0 : index
    %51 = vector.load %arg6[%c0_44, %c0_45] : memref<4x32xf32, #tpu.memory_space<vmem>>, vector<4x32xf32>
    tpu.vector_store %arg6[%c0_44, %c0_45], %50 {strides = array<i32>} : memref<4x32xf32, #tpu.memory_space<vmem>>, vector<4x32xf32>,
    %c7_i32 = arith.constant 7 : i32
    %52 = arith.cmpi eq, %arg1, %c7_i32 : i32
    %53 = arith.extui %52 : i1 to i32
    %c0_i32_46 = arith.constant 0 : i32
    %54 = arith.cmpi ne, %53, %c0_i32_46 : i32
    scf.if %54 {
      %c0_47 = arith.constant 0 : index
      %c0_48 = arith.constant 0 : index
      %c0_49 = arith.constant 0 : index
      %55 = vector.load %arg5[%c0_47, %c0_48, %c0_49] : memref<1x4x32xf32, #tpu.memory_space<vmem>>, vector<1x4x32xf32>
      %56 = vector.shape_cast %55 : vector<1x4x32xf32> to vector<4x32xf32>
      %57 = vector.shape_cast %50 : vector<4x32xf32> to vector<1x4x32xf32>
      tpu.vector_store %arg5[%c0_47, %c0_48, %c0_49], %57 {strides = array<i32>} : memref<1x4x32xf32, #tpu.memory_space<vmem>>, vector<1x4x32xf32>,
    } else {
    }
    return
  }
  func.func @transform_0(%arg0: i32, %arg1: i32) -> (i32, i32, i32, i32, i32) {
    %c1_i32 = arith.constant 1 : i32
    %0 = arith.subi %c1_i32, %arg0 : i32
    %1 = arith.muli %0, %arg1 : i32
    %c7_i32 = arith.constant 7 : i32
    %2 = arith.subi %c7_i32, %arg1 : i32
    %3 = arith.muli %arg0, %2 : i32
    %4 = arith.addi %1, %3 : i32
    %c0_i32 = arith.constant 0 : i32
    %c0_i32_0 = arith.constant 0 : i32
    %c0_i32_1 = arith.constant 0 : i32
    %c0_i32_2 = arith.constant 0 : i32
    return %arg0, %4, %c0_i32, %c0_i32_0, %c0_i32_1 : i32, i32, i32, i32, i32
  }
  func.func @transform_1(%arg0: i32, %arg1: i32) -> (i32, i32, i32, i32) {
    %c0_i32 = arith.constant 0 : i32
    %c0_i32_0 = arith.constant 0 : i32
    %c0_i32_1 = arith.constant 0 : i32
    %c0_i32_2 = arith.constant 0 : i32
    return %arg0, %c0_i32, %c0_i32_0, %c0_i32_1 : i32, i32, i32, i32
  }
  func.func @transform_2(%arg0: i32, %arg1: i32) -> (i32, i32, i32, i32) {
    %c0_i32 = arith.constant 0 : i32
    %c0_i32_0 = arith.constant 0 : i32
    %c0_i32_1 = arith.constant 0 : i32
    %c0_i32_2 = arith.constant 0 : i32
    return %arg0, %c0_i32, %c0_i32_0, %c0_i32_1 : i32, i32, i32, i32
  }
  func.func @transform_3(%arg0: i32, %arg1: i32) -> (i32, i32, i32) {
    %c0_i32 = arith.constant 0 : i32
    %c0_i32_0 = arith.constant 0 : i32
    %c0_i32_1 = arith.constant 0 : i32
    return %arg0, %c0_i32, %c0_i32_0 : i32, i32, i32
  }
}

module attributes {stable_mosaic.version = 11 : i64} {
  func.func @_linear_kernel(%arg0: i32, %arg1: i32, %arg2: memref<4x8xf32, #tpu.memory_space<vmem>>, %arg3: memref<8x16xf32, #tpu.memory_space<vmem>>, %arg4: memref<1x16xf32, #tpu.memory_space<vmem>>, %arg5: memref<4x16xf32, #tpu.memory_space<vmem>>) attributes {dimension_semantics = [#tpu.dimension_semantics<parallel>, #tpu.dimension_semantics<parallel>], iteration_bounds = array<i64: 1, 1>, scalar_prefetch = 0 : i64, scratch_operands = 0 : i64, tpu.core_type = #tpu.core_type<tc>, window_params = [{transform_indices = @transform_0, window_bounds = array<i64: 4, 8>}, {transform_indices = @transform_1, window_bounds = array<i64: 8, 16>}, {transform_indices = @transform_2, window_bounds = array<i64: 1, 16>}, {transform_indices = @transform_3, window_bounds = array<i64: 4, 16>}]} {
    %c0 = arith.constant 0 : index
    %c0_0 = arith.constant 0 : index
    %0 = vector.load %arg2[%c0, %c0_0] : memref<4x8xf32, #tpu.memory_space<vmem>>, vector<4x8xf32>
    %c0_1 = arith.constant 0 : index
    %c0_2 = arith.constant 0 : index
    %1 = vector.load %arg3[%c0_1, %c0_2] : memref<8x16xf32, #tpu.memory_space<vmem>>, vector<8x16xf32>
    %cst = arith.constant dense<0.000000e+00> : vector<4x16xf32>
    %2 = tpu.matmul %0, %1, %cst {dimension_numbers = #tpu.dot_dimension_numbers<[1], [0], [0], [1], [0, 0, 1, 1], [], []>} : vector<4x8xf32>, vector<8x16xf32>, vector<4x16xf32> -> vector<4x16xf32>
    %c0_3 = arith.constant 0 : index
    %c0_4 = arith.constant 0 : index
    %3 = vector.load %arg4[%c0_3, %c0_4] : memref<1x16xf32, #tpu.memory_space<vmem>>, vector<1x16xf32>
    %4 = vector.broadcast %3 : vector<1x16xf32> to vector<4x16xf32>
    %5 = arith.addf %2, %4 : vector<4x16xf32>
    %c0_5 = arith.constant 0 : index
    %c0_6 = arith.constant 0 : index
    %6 = vector.load %arg5[%c0_5, %c0_6] : memref<4x16xf32, #tpu.memory_space<vmem>>, vector<4x16xf32>
    tpu.vector_store %arg5[%c0_5, %c0_6], %5 {strides = array<i32>} : memref<4x16xf32, #tpu.memory_space<vmem>>, vector<4x16xf32>,
    return
  }
  func.func @transform_0(%arg0: i32, %arg1: i32) -> (i32, i32) {
    %c0_i32 = arith.constant 0 : i32
    %c0_i32_0 = arith.constant 0 : i32
    return %arg0, %c0_i32 : i32, i32
  }
  func.func @transform_1(%arg0: i32, %arg1: i32) -> (i32, i32) {
    %c0_i32 = arith.constant 0 : i32
    %c0_i32_0 = arith.constant 0 : i32
    return %c0_i32, %arg1 : i32, i32
  }
  func.func @transform_2(%arg0: i32, %arg1: i32) -> (i32, i32) {
    %c0_i32 = arith.constant 0 : i32
    %c0_i32_0 = arith.constant 0 : i32
    return %c0_i32, %arg1 : i32, i32
  }
  func.func @transform_3(%arg0: i32, %arg1: i32) -> (i32, i32) {
    %c0_i32 = arith.constant 0 : i32
    return %arg0, %arg1 : i32, i32
  }
}

module attributes {stable_mosaic.version = 11 : i64} {
  func.func @_linear_kernel(%arg0: i32, %arg1: i32, %arg2: memref<32x16xf32, #tpu.memory_space<vmem>>, %arg3: memref<16x96xf32, #tpu.memory_space<vmem>>, %arg4: memref<1x96xf32, #tpu.memory_space<vmem>>, %arg5: memref<32x96xf32, #tpu.memory_space<vmem>>) attributes {dimension_semantics = [#tpu.dimension_semantics<parallel>, #tpu.dimension_semantics<parallel>], iteration_bounds = array<i64: 1, 1>, scalar_prefetch = 0 : i64, scratch_operands = 0 : i64, tpu.core_type = #tpu.core_type<tc>, window_params = [{transform_indices = @transform_0, window_bounds = array<i64: 32, 16>}, {transform_indices = @transform_1, window_bounds = array<i64: 16, 96>}, {transform_indices = @transform_2, window_bounds = array<i64: 1, 96>}, {transform_indices = @transform_3, window_bounds = array<i64: 32, 96>}]} {
    %c0 = arith.constant 0 : index
    %c0_0 = arith.constant 0 : index
    %0 = vector.load %arg2[%c0, %c0_0] : memref<32x16xf32, #tpu.memory_space<vmem>>, vector<32x16xf32>
    %c0_1 = arith.constant 0 : index
    %c0_2 = arith.constant 0 : index
    %1 = vector.load %arg3[%c0_1, %c0_2] : memref<16x96xf32, #tpu.memory_space<vmem>>, vector<16x96xf32>
    %cst = arith.constant dense<0.000000e+00> : vector<32x96xf32>
    %2 = tpu.matmul %0, %1, %cst {dimension_numbers = #tpu.dot_dimension_numbers<[1], [0], [0], [1], [0, 0, 1, 1], [], []>} : vector<32x16xf32>, vector<16x96xf32>, vector<32x96xf32> -> vector<32x96xf32>
    %c0_3 = arith.constant 0 : index
    %c0_4 = arith.constant 0 : index
    %3 = vector.load %arg4[%c0_3, %c0_4] : memref<1x96xf32, #tpu.memory_space<vmem>>, vector<1x96xf32>
    %4 = vector.broadcast %3 : vector<1x96xf32> to vector<32x96xf32>
    %5 = arith.addf %2, %4 : vector<32x96xf32>
    %c0_5 = arith.constant 0 : index
    %c0_6 = arith.constant 0 : index
    %6 = vector.load %arg5[%c0_5, %c0_6] : memref<32x96xf32, #tpu.memory_space<vmem>>, vector<32x96xf32>
    tpu.vector_store %arg5[%c0_5, %c0_6], %5 {strides = array<i32>} : memref<32x96xf32, #tpu.memory_space<vmem>>, vector<32x96xf32>,
    return
  }
  func.func @transform_0(%arg0: i32, %arg1: i32) -> (i32, i32) {
    %c0_i32 = arith.constant 0 : i32
    %c0_i32_0 = arith.constant 0 : i32
    return %arg0, %c0_i32 : i32, i32
  }
  func.func @transform_1(%arg0: i32, %arg1: i32) -> (i32, i32) {
    %c0_i32 = arith.constant 0 : i32
    %c0_i32_0 = arith.constant 0 : i32
    return %c0_i32, %arg1 : i32, i32
  }
  func.func @transform_2(%arg0: i32, %arg1: i32) -> (i32, i32) {
    %c0_i32 = arith.constant 0 : i32
    %c0_i32_0 = arith.constant 0 : i32
    return %c0_i32, %arg1 : i32, i32
  }
  func.func @transform_3(%arg0: i32, %arg1: i32) -> (i32, i32) {
    %c0_i32 = arith.constant 0 : i32
    return %arg0, %arg1 : i32, i32
  }
}

module attributes {stable_mosaic.version = 11 : i64} {
  func.func @_linear_kernel(%arg0: i32, %arg1: i32, %arg2: memref<32x32xf32, #tpu.memory_space<vmem>>, %arg3: memref<32x32xf32, #tpu.memory_space<vmem>>, %arg4: memref<1x32xf32, #tpu.memory_space<vmem>>, %arg5: memref<32x32xf32, #tpu.memory_space<vmem>>) attributes {dimension_semantics = [#tpu.dimension_semantics<parallel>, #tpu.dimension_semantics<parallel>], iteration_bounds = array<i64: 1, 1>, scalar_prefetch = 0 : i64, scratch_operands = 0 : i64, tpu.core_type = #tpu.core_type<tc>, window_params = [{transform_indices = @transform_0, window_bounds = array<i64: 32, 32>}, {transform_indices = @transform_1, window_bounds = array<i64: 32, 32>}, {transform_indices = @transform_2, window_bounds = array<i64: 1, 32>}, {transform_indices = @transform_3, window_bounds = array<i64: 32, 32>}]} {
    %c0 = arith.constant 0 : index
    %c0_0 = arith.constant 0 : index
    %0 = vector.load %arg2[%c0, %c0_0] : memref<32x32xf32, #tpu.memory_space<vmem>>, vector<32x32xf32>
    %c0_1 = arith.constant 0 : index
    %c0_2 = arith.constant 0 : index
    %1 = vector.load %arg3[%c0_1, %c0_2] : memref<32x32xf32, #tpu.memory_space<vmem>>, vector<32x32xf32>
    %cst = arith.constant dense<0.000000e+00> : vector<32x32xf32>
    %2 = tpu.matmul %0, %1, %cst {dimension_numbers = #tpu.dot_dimension_numbers<[1], [0], [0], [1], [0, 0, 1, 1], [], []>} : vector<32x32xf32>, vector<32x32xf32>, vector<32x32xf32> -> vector<32x32xf32>
    %c0_3 = arith.constant 0 : index
    %c0_4 = arith.constant 0 : index
    %3 = vector.load %arg4[%c0_3, %c0_4] : memref<1x32xf32, #tpu.memory_space<vmem>>, vector<1x32xf32>
    %4 = vector.broadcast %3 : vector<1x32xf32> to vector<32x32xf32>
    %5 = arith.addf %2, %4 : vector<32x32xf32>
    %c0_5 = arith.constant 0 : index
    %c0_6 = arith.constant 0 : index
    %6 = vector.load %arg5[%c0_5, %c0_6] : memref<32x32xf32, #tpu.memory_space<vmem>>, vector<32x32xf32>
    tpu.vector_store %arg5[%c0_5, %c0_6], %5 {strides = array<i32>} : memref<32x32xf32, #tpu.memory_space<vmem>>, vector<32x32xf32>,
    return
  }
  func.func @transform_0(%arg0: i32, %arg1: i32) -> (i32, i32) {
    %c0_i32 = arith.constant 0 : i32
    %c0_i32_0 = arith.constant 0 : i32
    return %arg0, %c0_i32 : i32, i32
  }
  func.func @transform_1(%arg0: i32, %arg1: i32) -> (i32, i32) {
    %c0_i32 = arith.constant 0 : i32
    %c0_i32_0 = arith.constant 0 : i32
    return %c0_i32, %arg1 : i32, i32
  }
  func.func @transform_2(%arg0: i32, %arg1: i32) -> (i32, i32) {
    %c0_i32 = arith.constant 0 : i32
    %c0_i32_0 = arith.constant 0 : i32
    return %c0_i32, %arg1 : i32, i32
  }
  func.func @transform_3(%arg0: i32, %arg1: i32) -> (i32, i32) {
    %c0_i32 = arith.constant 0 : i32
    return %arg0, %arg1 : i32, i32
  }
}

module attributes {stable_mosaic.version = 11 : i64} {
  func.func @_gru_decoder_kernel(%arg0: i32, %arg1: memref<1x3x4x32xf32, #tpu.memory_space<vmem>>, %arg2: memref<3x32x32xf32, #tpu.memory_space<vmem>>, %arg3: memref<3x1x32xf32, #tpu.memory_space<vmem>>, %arg4: memref<8x4x32xf32, #tpu.memory_space<vmem>>, %arg5: memref<4x32xf32, #tpu.memory_space<vmem>>) attributes {dimension_semantics = [#tpu.dimension_semantics<arbitrary>], iteration_bounds = array<i64: 8>, scalar_prefetch = 0 : i64, scratch_operands = 1 : i64, tpu.core_type = #tpu.core_type<tc>, window_params = [{transform_indices = @transform_0, window_bounds = array<i64: 1, 3, 4, 32>}, {pipeline_mode = #tpu.pipeline_mode<synchronous>, transform_indices = @transform_1, window_bounds = array<i64: 3, 32, 32>}, {pipeline_mode = #tpu.pipeline_mode<synchronous>, transform_indices = @transform_2, window_bounds = array<i64: 3, 1, 32>}, {pipeline_mode = #tpu.pipeline_mode<synchronous>, transform_indices = @transform_3, window_bounds = array<i64: 8, 4, 32>}]} {
    %c0_i32 = arith.constant 0 : i32
    %0 = arith.cmpi eq, %arg0, %c0_i32 : i32
    %1 = arith.extui %0 : i1 to i32
    %c0_i32_0 = arith.constant 0 : i32
    %2 = arith.cmpi ne, %1, %c0_i32_0 : i32
    scf.if %2 {
      %cst_39 = arith.constant 0.000000e+00 : f32
      %55 = vector.broadcast %cst_39 : f32 to vector<4x32xf32>
      %c0_40 = arith.constant 0 : index
      %c0_41 = arith.constant 0 : index
      %56 = vector.load %arg5[%c0_40, %c0_41] : memref<4x32xf32, #tpu.memory_space<vmem>>, vector<4x32xf32>
      tpu.vector_store %arg5[%c0_40, %c0_41], %55 {strides = array<i32>} : memref<4x32xf32, #tpu.memory_space<vmem>>, vector<4x32xf32>,
    } else {
    }
    %c0 = arith.constant 0 : index
    %c0_1 = arith.constant 0 : index
    %3 = vector.load %arg5[%c0, %c0_1] : memref<4x32xf32, #tpu.memory_space<vmem>>, vector<4x32xf32>
    %c0_2 = arith.constant 0 : index
    %c0_3 = arith.constant 0 : index
    %c0_4 = arith.constant 0 : index
    %4 = vector.load %arg2[%c0_2, %c0_3, %c0_4] : memref<3x32x32xf32, #tpu.memory_space<vmem>>, vector<1x32x32xf32>
    %5 = vector.shape_cast %4 : vector<1x32x32xf32> to vector<32x32xf32>
    %cst = arith.constant dense<0.000000e+00> : vector<4x32xf32>
    %6 = tpu.matmul %3, %5, %cst {dimension_numbers = #tpu.dot_dimension_numbers<[1], [0], [0], [1], [0, 0, 1, 1], [], []>} : vector<4x32xf32>, vector<32x32xf32>, vector<4x32xf32> -> vector<4x32xf32>
    %c0_5 = arith.constant 0 : index
    %c0_6 = arith.constant 0 : index
    %c0_7 = arith.constant 0 : index
    %7 = vector.load %arg3[%c0_5, %c0_6, %c0_7] : memref<3x1x32xf32, #tpu.memory_space<vmem>>, vector<1x1x32xf32>
    %8 = vector.shape_cast %7 : vector<1x1x32xf32> to vector<1x32xf32>
    %9 = vector.broadcast %8 : vector<1x32xf32> to vector<4x32xf32>
    %10 = arith.addf %6, %9 : vector<4x32xf32>
    %c1 = arith.constant 1 : index
    %c0_8 = arith.constant 0 : index
    %c0_9 = arith.constant 0 : index
    %11 = vector.load %arg2[%c1, %c0_8, %c0_9] : memref<3x32x32xf32, #tpu.memory_space<vmem>>, vector<1x32x32xf32>
    %12 = vector.shape_cast %11 : vector<1x32x32xf32> to vector<32x32xf32>
    %cst_10 = arith.constant dense<0.000000e+00> : vector<4x32xf32>
    %13 = tpu.matmul %3, %12, %cst_10 {dimension_numbers = #tpu.dot_dimension_numbers<[1], [0], [0], [1], [0, 0, 1, 1], [], []>} : vector<4x32xf32>, vector<32x32xf32>, vector<4x32xf32> -> vector<4x32xf32>
    %c1_11 = arith.constant 1 : index
    %c0_12 = arith.constant 0 : index
    %c0_13 = arith.constant 0 : index
    %14 = vector.load %arg3[%c1_11, %c0_12, %c0_13] : memref<3x1x32xf32, #tpu.memory_space<vmem>>, vector<1x1x32xf32>
    %15 = vector.shape_cast %14 : vector<1x1x32xf32> to vector<1x32xf32>
    %16 = vector.broadcast %15 : vector<1x32xf32> to vector<4x32xf32>
    %17 = arith.addf %13, %16 : vector<4x32xf32>
    %c2 = arith.constant 2 : index
    %c0_14 = arith.constant 0 : index
    %c0_15 = arith.constant 0 : index
    %18 = vector.load %arg2[%c2, %c0_14, %c0_15] : memref<3x32x32xf32, #tpu.memory_space<vmem>>, vector<1x32x32xf32>
    %19 = vector.shape_cast %18 : vector<1x32x32xf32> to vector<32x32xf32>
    %cst_16 = arith.constant dense<0.000000e+00> : vector<4x32xf32>
    %20 = tpu.matmul %3, %19, %cst_16 {dimension_numbers = #tpu.dot_dimension_numbers<[1], [0], [0], [1], [0, 0, 1, 1], [], []>} : vector<4x32xf32>, vector<32x32xf32>, vector<4x32xf32> -> vector<4x32xf32>
    %c2_17 = arith.constant 2 : index
    %c0_18 = arith.constant 0 : index
    %c0_19 = arith.constant 0 : index
    %21 = vector.load %arg3[%c2_17, %c0_18, %c0_19] : memref<3x1x32xf32, #tpu.memory_space<vmem>>, vector<1x1x32xf32>
    %22 = vector.shape_cast %21 : vector<1x1x32xf32> to vector<1x32xf32>
    %23 = vector.broadcast %22 : vector<1x32xf32> to vector<4x32xf32>
    %24 = arith.addf %20, %23 : vector<4x32xf32>
    %c0_20 = arith.constant 0 : index
    %c0_21 = arith.constant 0 : index
    %c0_22 = arith.constant 0 : index
    %c0_23 = arith.constant 0 : index
    %25 = vector.load %arg1[%c0_20, %c0_21, %c0_22, %c0_23] : memref<1x3x4x32xf32, #tpu.memory_space<vmem>>, vector<1x1x4x32xf32>
    %26 = vector.shape_cast %25 : vector<1x1x4x32xf32> to vector<4x32xf32>
    %27 = arith.addf %26, %10 : vector<4x32xf32>
    %28 = arith.negf %27 : vector<4x32xf32>
    %29 = math.exp %28 : vector<4x32xf32>
    %cst_24 = arith.constant 1.000000e+00 : f32
    %30 = vector.broadcast %cst_24 : f32 to vector<4x32xf32>
    %31 = arith.addf %30, %29 : vector<4x32xf32>
    %32 = arith.divf %30, %31 : vector<4x32xf32>
    %c0_25 = arith.constant 0 : index
    %c1_26 = arith.constant 1 : index
    %c0_27 = arith.constant 0 : index
    %c0_28 = arith.constant 0 : index
    %33 = vector.load %arg1[%c0_25, %c1_26, %c0_27, %c0_28] : memref<1x3x4x32xf32, #tpu.memory_space<vmem>>, vector<1x1x4x32xf32>
    %34 = vector.shape_cast %33 : vector<1x1x4x32xf32> to vector<4x32xf32>
    %35 = arith.addf %34, %17 : vector<4x32xf32>
    %36 = arith.negf %35 : vector<4x32xf32>
    %37 = math.exp %36 : vector<4x32xf32>
    %cst_29 = arith.constant 1.000000e+00 : f32
    %38 = vector.broadcast %cst_29 : f32 to vector<4x32xf32>
    %39 = arith.addf %38, %37 : vector<4x32xf32>
    %40 = arith.divf %38, %39 : vector<4x32xf32>
    %c0_30 = arith.constant 0 : index
    %c2_31 = arith.constant 2 : index
    %c0_32 = arith.constant 0 : index
    %c0_33 = arith.constant 0 : index
    %41 = vector.load %arg1[%c0_30, %c2_31, %c0_32, %c0_33] : memref<1x3x4x32xf32, #tpu.memory_space<vmem>>, vector<1x1x4x32xf32>
    %42 = vector.shape_cast %41 : vector<1x1x4x32xf32> to vector<4x32xf32>
    %43 = arith.mulf %32, %24 : vector<4x32xf32>
    %44 = arith.addf %42, %43 : vector<4x32xf32>
    %45 = math.tanh %44 : vector<4x32xf32>
    %cst_34 = arith.constant 1.000000e+00 : f32
    %46 = vector.broadcast %cst_34 : f32 to vector<4x32xf32>
    %47 = arith.subf %46, %40 : vector<4x32xf32>
    %48 = arith.mulf %47, %45 : vector<4x32xf32>
    %49 = arith.mulf %40, %3 : vector<4x32xf32>
    %50 = arith.addf %48, %49 : vector<4x32xf32>
    %c0_35 = arith.constant 0 : index
    %c0_36 = arith.constant 0 : index
    %51 = vector.load %arg5[%c0_35, %c0_36] : memref<4x32xf32, #tpu.memory_space<vmem>>, vector<4x32xf32>
    tpu.vector_store %arg5[%c0_35, %c0_36], %50 {strides = array<i32>} : memref<4x32xf32, #tpu.memory_space<vmem>>, vector<4x32xf32>,
    %52 = vector.shape_cast %50 : vector<4x32xf32> to vector<1x4x32xf32>
    %53 = arith.index_cast %arg0 : i32 to index
    %c0_37 = arith.constant 0 : index
    %c0_38 = arith.constant 0 : index
    %54 = vector.load %arg4[%53, %c0_37, %c0_38] : memref<8x4x32xf32, #tpu.memory_space<vmem>>, vector<1x4x32xf32>
    tpu.vector_store %arg4[%53, %c0_37, %c0_38], %52 {strides = array<i32>} : memref<8x4x32xf32, #tpu.memory_space<vmem>>, vector<1x4x32xf32>,
    return
  }
  func.func @transform_0(%arg0: i32) -> (i32, i32, i32, i32) {
    %c0_i32 = arith.constant 0 : i32
    %c0_i32_0 = arith.constant 0 : i32
    %c0_i32_1 = arith.constant 0 : i32
    %c0_i32_2 = arith.constant 0 : i32
    return %arg0, %c0_i32, %c0_i32_0, %c0_i32_1 : i32, i32, i32, i32
  }
  func.func @transform_1(%arg0: i32) -> (i32, i32, i32) {
    %c0_i32 = arith.constant 0 : i32
    %c0_i32_0 = arith.constant 0 : i32
    %c0_i32_1 = arith.constant 0 : i32
    %c0_i32_2 = arith.constant 0 : i32
    return %c0_i32, %c0_i32_0, %c0_i32_1 : i32, i32, i32
  }
  func.func @transform_2(%arg0: i32) -> (i32, i32, i32) {
    %c0_i32 = arith.constant 0 : i32
    %c0_i32_0 = arith.constant 0 : i32
    %c0_i32_1 = arith.constant 0 : i32
    %c0_i32_2 = arith.constant 0 : i32
    return %c0_i32, %c0_i32_0, %c0_i32_1 : i32, i32, i32
  }
  func.func @transform_3(%arg0: i32) -> (i32, i32, i32) {
    %c0_i32 = arith.constant 0 : i32
    %c0_i32_0 = arith.constant 0 : i32
    %c0_i32_1 = arith.constant 0 : i32
    %c0_i32_2 = arith.constant 0 : i32
    return %c0_i32, %c0_i32_0, %c0_i32_1 : i32, i32, i32
  }
}

</mosaic_0001>

<bundles_post_ra>
// kernel: vae_forward.7
= control target key start
LH: loop header
LB: loop body
LE: loop exit
PB: predicated region body
PF: predicated region fallthrough
CT: control target
= control target key end

     0   :  { %v160_v3 = vmov 0.0   ;;  %vm34_vm0 = vcmask 130048   ;;  %v24_v11 = vlaneseq  ;;  %vm137_vm1 = vcmask 523264   ;;  %s236_s1 = inlined_call_operand.vmem [shape: f32[16,192], index: 1, kind: input, shape index: {}]   ;;  %s237_s0 = inlined_call_operand.vmem [shape: f32[32,16], index: 0, kind: input, shape index: {}]   ;;  %s238_s2 = inlined_call_operand.vmem [shape: f32[1,192], index: 2, kind: input, shape index: {}]   ;;  %s239_s3 = inlined_call_operand.vmem [shape: f32[32,192], index: 3, kind: output, shape index: {}]  }
   0x1   :  { %v19_v0 = vld [vmem:[%s236_s1 + $0x8] sm:$0xff]  ;;  %v21_v1 = vld [vmem:[%s236_s1 + $0x18] sm:$0xff]  ;;  %v18_v2 = vld [vmem:[%s236_s1] sm:$0xff]  ;;  %111 = vmatprep.mubr.f32.mxu0 %v160_v3  ;;  %123 = vmatprep.mubr.f32.mxu1 %v160_v3 }
   0x2   :  { %v153_v4 = vpack.c.bf16 %v21_v1, %v19_v0  ;;  %v20_v5 = vld [vmem:[%s236_s1 + $0x10] sm:$0xff]  ;;  %v14_v7 = vld [vmem:[%s237_s0] sm:$0xff]  ;;  %v15_v9 = vld [vmem:[%s237_s0 + $0x8] sm:$0xff]  ;;  %v25_v12 = vshrl.u32 %v24_v11, 7 }
   0x3   :  { %v155_v6 = vpack.c.bf16 %v20_v5, %v18_v2  ;;  %v16_v8 = vld [vmem:[%s237_s0 + $0x10] sm:$0xff]  ;;  %v17_v10 = vld [vmem:[%s237_s0 + $0x18] sm:$0xff]  ;;  %v22_v14 = vld [vmem:[%s238_s2] sm:$0x3] }
   0x4   :  { %154 = vmatprep.subr.bf16.mxu0 %v153_v4  ;;  %157 = vmatprep.subr.bf16.mxu1 %v153_v4  ;;  %v26_v13 = vsub.s32 0, %v25_v12  ;;  %v30_v15 = vsub.s32 1, %v25_v12 }
   0x5   :  { %156 = vmatpush1.bf16.msra.mxu0 %v155_v6  ;;  %158 = vmatpush1.bf16.msra.mxu1 %v155_v6 }
   0x6   :  { %v27_v16 = vrot.slane %v22_v14, %v26_v13  ;;  %v31_v17 = vrot.slane %v22_v14, %v30_v15 }
   0x8   :  { %149 = vmatmul.mubr.msk.f32.vlgmr.msra.gmra.mrb[0].mxu0 %vm34_vm0, %v14_v7  ;;  %151 = vmatmul.mubr.msk.f32.vlgmr.msra.gmra.mrb[0].mxu1 %vm34_vm0, %v16_v8 }
   0x9   :  { %117 = vmatprep.mubr.f32.mxu0 %v160_v3  ;;  %129 = vmatprep.mubr.f32.mxu1 %v160_v3 }
   0xc   :  { %150 = vmatmul.mubr.msk.f32.gmra.mrb[2].mxu0 %vm34_vm0, %v15_v9  ;;  %152 = vmatmul.mubr.msk.f32.gmra.mrb[2].mxu1 %vm34_vm0, %v17_v10 }
  0xdb   :  { %v113_v18 = vpop.f32.mrb[0].mxu0  ;;  %v125_v19 = vpop.f32.mrb[0].mxu1 }
  0xdc   :  { %v114_v20 = vadd.f32 %v113_v18, %v27_v16  ;;  %v126_v21 = vadd.f32 %v125_v19, %v27_v16  ;;  %v115_v22 = vpop.f32.mrb[1].mxu0  ;;  %v127_v23 = vpop.f32.mrb[1].mxu1 }
  0xdd   :  { %v116_v24 = vadd.f32 %v115_v22, %v31_v17  ;;  %v128_v25 = vadd.f32 %v127_v23, %v31_v17 }
  0xde   :  { %136 = vst [vmem:[%s239_s3] sm:$0xff] %v114_v20  ;;  %141 = vst [vmem:[%s239_s3 + $0x20] sm:$0xff] %v126_v21 }
  0xdf   :  { %138 = vst.msk [vmem:[%s239_s3 + $0x8] sm:$0xff] %vm137_vm1, %v116_v24  ;;  %142 = vst.msk [vmem:[%s239_s3 + $0x28] sm:$0xff] %vm137_vm1, %v128_v25  ;;  %v119_v26 = vpop.f32.mrb[2].mxu0  ;;  %v131_v27 = vpop.f32.mrb[2].mxu1 }
  0xe0   :  { %v120_v28 = vadd.f32 %v119_v26, %v27_v16  ;;  %v132_v29 = vadd.f32 %v131_v27, %v27_v16  ;;  %v121_v30 = vpop.f32.mrb[3].mxu0  ;;  %v133_v31 = vpop.f32.mrb[3].mxu1 }
  0xe1   :  { %v122_v32 = vadd.f32 %v121_v30, %v31_v17  ;;  %v134_v33 = vadd.f32 %v133_v31, %v31_v17 }
  0xe2   :  { %139 = vst [vmem:[%s239_s3 + $0x10] sm:$0xff] %v120_v28  ;;  %143 = vst [vmem:[%s239_s3 + $0x30] sm:$0xff] %v132_v29 }
  0xe3   :  { %140 = vst.msk [vmem:[%s239_s3 + $0x18] sm:$0xff] %vm137_vm1, %v122_v32  ;;  %144 = vst.msk [vmem:[%s239_s3 + $0x38] sm:$0xff] %vm137_vm1, %v134_v33 }

// kernel: vae_forward.9
= control target key start
LH: loop header
LB: loop body
LE: loop exit
PB: predicated region body
PF: predicated region fallthrough
CT: control target
= control target key end

     0   :  { %v155_v0 = vmov 0.0|0.0   ;;  %vm156_vm0 = vmmov 0   ;;  %v157_v4 = vmov 0.0   ;;  %vm30_vm1 = vcmask 523264   ;;  %s211_s1 = inlined_call_operand.vmem [shape: f32[64,16], index: 1, kind: input, shape index: {}]   ;;  %s212_s0 = inlined_call_operand.vmem [shape: f32[4,64], index: 0, kind: input, shape index: {}]   ;;  %s213_s2 = inlined_call_operand.vmem [shape: f32[1,16], index: 2, kind: input, shape index: {}]   ;;  %s214_s3 = inlined_call_operand.vmem [shape: f32[4,16], index: 3, kind: output, shape index: {}]  }
   0x1   :  { %140 = vmatprep.subr.bf16.mxu0 %v155_v0  ;;  %v15_v1 = vld [vmem:[%s211_s1] sm:$0xff]  ;;  %v16_v2 = vld [vmem:[%s211_s1 + $0x8] sm:$0xff]  ;;  %v17_v3 = vld [vmem:[%s211_s1 + $0x10] sm:$0xff]  ;;  %137 = vmatprep.mubr.msk.f32.mxu0 %vm156_vm0, %v157_v4  ;;  %vm104_vm2 = vcmask 125952  }
   0x2   :  { %v141_v5 = vpack.c.bf16 %v16_v2, %v15_v1  ;;  %v18_v6 = vld [vmem:[%s211_s1 + $0x18] sm:$0xff]  ;;  %v19_v8 = vld [vmem:[%s211_s1 + $0x20] sm:$0xff]  ;;  %v20_v9 = vld [vmem:[%s211_s1 + $0x28] sm:$0xff] }
   0x3   :  { %v144_v7 = vpack.c.bf16 %v18_v6, %v17_v3  ;;  %v147_v10 = vpack.c.bf16 %v20_v9, %v19_v8  ;;  %v21_v11 = vld [vmem:[%s211_s1 + $0x30] sm:$0xff]  ;;  %v22_v12 = vld [vmem:[%s211_s1 + $0x38] sm:$0xff]  ;;  %v14_v14 = vld [vmem:[%s212_s0] sm:$0xf] }
   0x4   :  { %142 = vmatpush3.bf16.msra.mxu0 %v141_v5  ;;  %v150_v13 = vpack.c.bf16 %v22_v12, %v21_v11  ;;  %v110_v15 = vld [vmem:[%s213_s2] ss:$0 sm:$0xff] }
   0x5   :  { %143 = vmatprep.subr.bf16.mxu0 %v155_v0 }
   0x8   :  { %145 = vmatpush3.bf16.msra.mxu0 %v144_v7 }
   0x9   :  { %146 = vmatprep.subr.bf16.mxu0 %v155_v0 }
   0xc   :  { %148 = vmatpush3.bf16.msra.mxu0 %v147_v10 }
   0xd   :  { %149 = vmatprep.subr.bf16.mxu0 %v155_v0 }
  0x10   :  { %151 = vmatpush3.bf16.msra.mxu0 %v150_v13 }
  0x13   :  { %138 = vmatmul.mubr.msk.f32.vlgmr.msra.gmra.mrb[0].mxu0 %vm30_vm1, %v14_v14 }
  0xe6   :  { %v100_v16 = vpop.f32.mrb[0].mxu0 }
  0xe7   :  { %v101_v17 = vadd.f32 %v110_v15, %v100_v16  ;;  %v139_v18 = vpop.f32.mrb[1].mxu0 }
  0xe9   :  { %105 = vst.msk [vmem:[%s214_s3] sm:$0xf] %vm104_vm2, %v101_v17 }

// kernel: vae_forward.8
= control target key start
LH: loop header
LB: loop body
LE: loop exit
PB: predicated region body
PF: predicated region fallthrough
CT: control target
= control target key end

     0   :  { %s875_s12 = smov 0   ;;  %s877_s13 = smov 0   ;;  %s968_s0 = inlined_call_operand.vmem [shape: f32[2,8,3,4,32], index: 0, kind: input, shape index: {}]   ;;  %s969_s1 = inlined_call_operand.vmem [shape: f32[2,3,32,32], index: 1, kind: input, shape index: {}]   ;;  %s970_s2 = inlined_call_operand.vmem [shape: f32[2,3,1,32], index: 2, kind: input, shape index: {}]   ;;  %s971_s3 = inlined_call_operand.vmem [shape: f32[2,4,32], index: 3, kind: output, shape index: {}]  }
   0x1   :  { %s879_s14 = smov 0   ;;  %s881_s15 = smov 0  }
   0x2   :  { %s883_s16 = smov 0  }
   0x3 LB: > { %s22_s17 = sadd.s32 1, %s841_s14  ;;  %s25_s18 = sadd.s32 1, %s845_s15  ;;  %s849_s16 = sphi %s883_s16, %s13_s16   ;;  %s845_s15 = sphi %s881_s15, %s975_s15   ;;  %s841_s14 = sphi %s879_s14, %s974_s14   ;;  %s837_s13 = sphi %s877_s13, %s973_s13   ;;  %s833_s12 = sphi %s875_s12, %s972_s12  }
   0x4   : > { %p23_p0 = scmp.ge.s32.totalorder %s22_s17, 8  ;;  %p659_p1 = scmp.ge.s32.totalorder %s849_s16, 1 }
   0x5   : > { %p194_p2 = scmp.lt.s32.totalorder %s849_s16, 17 }
   0x6   : > { %s977_s17 = smov (%p23_p0, %s22_s17), 0  ;;  %s979_s18 = smov (!%p23_p0, %s25_s18), %s845_s15 }
   0x7   : > { %p195_p3 = pnand %p659_p1, %p194_p2  ;;  %p27_p4 = scmp.ge.s32.totalorder %s979_s18, 2 }
   0x8   : > { %s235_s19 = ssub.s32 (!%p195_p3), 1, %s837_s13  ;;  %s237_s20 = ssub.s32 (!%p195_p3), 7, %s833_s12 }
   0x9   : > { %s981_s18 = smov (%p27_p4, %s979_s18), 0  ;;  %198 = sbr.rel (%p195_p3) target bundleno = 300 (0x12c), region = 32 }
   0xa   : > { %s236_s21 = smul.u32 (!%p195_p3), %s833_s12, %s235_s19  ;;  %p240_p5 = scmp.lt.s32.totalorder (!%p195_p3), %s837_s13, 1 }
   0xb   : > { %s238_s22 = smul.u32 (!%p195_p3), %s837_s13, %s237_s20  ;;  %p663_p7 = scmp.ne.s32.totalorder (!%p195_p3), %s833_s12, 0 }
   0xd   : > { %s239_s23 = sadd.s32 (!%p195_p3), %s238_s22, %s236_s21 }
   0xe   : > { %p242_p6 = scmp.lt.s32.totalorder (!%p195_p3), %s239_s23, 7 }
  0x10   : > { %s983_s13 = smov (!%p240_p5, %s837_s13), 1  ;;  %s985_s23 = smov (!%p242_p6, %s239_s23), 7 }
  0x11   : > { %s754_s24 = smul.u32 24, %s983_s13  ;;  %s662_s26 = sshll.u32 %s983_s13, 2  ;;  %vm271_vm0 = vcmask (!%p663_p7), 257024   ;;  %v851_v0 = vmov (!%p663_p7), 0.0  }
  0x12   : > { %s755_s25 = smul.u32 96, %s983_s13  ;;  %s917_s7 = scalar_lea.vmem %s971_s3, %s662_s26  ;;  %272 = vst.msk [vmem:[#allocation2] sm:$0xf] (!%p663_p7), %vm271_vm0, %v851_v0 }
  0x13   : > { %s756_s30 = smul.u32 3, %s983_s13 }
  0x14   : > { %s912_s29 = scalar_lea.vmem %s969_s1, %s755_s25  ;;  %s753_s4 = smul.u32 3, %s985_s23 }
  0x15   : > { %s922_s10 = scalar_lea.vmem %s970_s2, %s756_s30  ;;  %270 = sbr.rel (%p663_p7) target bundleno = 28 (0x1c), region = 36 }
  0x16   : > { %s246_s11 = sadd.s32 %s754_s24, %s753_s4 }
  0x17   : > { %s660_s19 = sshll.u32 %s246_s11, 2 }
  0x18   : > { %s927_s22 = scalar_lea.vmem %s968_s0, %s660_s19 }
  0x1c PF: > { %v274_v1 = vld [vmem:[%s912_s29] sm:$0xff]  ;;  %v275_v2 = vld [vmem:[%s912_s29 + $0x8] sm:$0xff]  ;;  %v276_v3 = vld [vmem:[%s912_s29 + $0x10] sm:$0xff]  ;;  %v852_v4 = vmov 0.0|0.0   ;;  %vm853_vm1 = vmmov 0   ;;  %v854_v7 = vmov 0.0  }
  0x1d   : > { %735 = vmatprep.subr.bf16.mxu0 %v852_v4  ;;  %v736_v5 = vpack.c.bf16 %v275_v2, %v274_v1  ;;  %v277_v6 = vld [vmem:[%s912_s29 + $0x18] sm:$0xff]  ;;  %710 = vmatprep.mubr.msk.f32.mxu0 %vm853_vm1, %v854_v7  ;;  %v666_v8 = vld [vmem:[%s912_s29 + $0x20] sm:$0xff]  ;;  %v667_v9 = vld [vmem:[%s912_s29 + $0x28] sm:$0xff]  ;;  %vm285_vm2 = vcmask 261120   ;;  %vm551_vm3 = vcmask 257024   ;;  %p684_p8 = scmp.ne.s32.totalorder %s833_s12, 7 }
  0x1e   : > { %741 = vmatprep.subr.bf16.mxu1 %v852_v4  ;;  %v668_v10 = vld [vmem:[%s912_s29 + $0x30] sm:$0xff]  ;;  %v669_v11 = vld [vmem:[%s912_s29 + $0x38] sm:$0xff]  ;;  %721 = vmatprep.mubr.msk.f32.mxu1 %vm853_vm1, %v854_v7  ;;  %v739_v12 = vpack.c.bf16 %v277_v6, %v276_v3  ;;  %v742_v13 = vpack.c.bf16 %v667_v9, %v666_v8  ;;  %v673_v14 = vld [vmem:[%s912_s29 + $0x40] sm:$0xff] }
  0x1f   : > { %737 = vmatpush3.bf16.msra.mxu0 %v736_v5  ;;  %v674_v15 = vld [vmem:[%s912_s29 + $0x48] sm:$0xff]  ;;  %v745_v16 = vpack.c.bf16 %v669_v11, %v668_v10  ;;  %v273_v17 = vld [vmem:[#allocation2] sm:$0xf]  ;;  %v675_v19 = vld [vmem:[%s912_s29 + $0x50] sm:$0xff] }
  0x20   : > { %738 = vmatprep.subr.bf16.mxu0 %v852_v4  ;;  %743 = vmatpush3.bf16.msra.mxu1 %v742_v13  ;;  %v748_v18 = vpack.c.bf16 %v674_v15, %v673_v14  ;;  %v676_v20 = vld [vmem:[%s912_s29 + $0x58] sm:$0xff]  ;;  %v664_v22 = vld [vmem:[%s922_s10] ss:$0 sm:$0xff]  ;;  %v671_v25 = vld [vmem:[%s922_s10 + $0x1] ss:$0 sm:$0xff] }
  0x21   : > { %744 = vmatprep.subr.bf16.mxu1 %v852_v4  ;;  %v751_v21 = vpack.c.bf16 %v676_v20, %v675_v19  ;;  %v525_v24 = vld [vmem:[%s927_s22] sm:$0xf]  ;;  %v681_v29 = vld [vmem:[%s927_s22 + $0x4] sm:$0xf]  ;;  %v683_v45 = vld [vmem:[%s927_s22 + $0x8] sm:$0xf] }
  0x22   : > { %v678_v41 = vld [vmem:[%s922_s10 + $0x2] ss:$0 sm:$0xff] }
  0x23   : > { %740 = vmatpush3.bf16.msra.mxu0 %v739_v12 }
  0x24   : > { %747 = vmatprep.subr.bf16.mxu0 %v852_v4  ;;  %746 = vmatpush3.bf16.msra.mxu1 %v745_v16 }
  0x26   : > { %711 = vmatmul.mubr.msk.f32.vlgmr.msra.gmra.mrb[0].mxu0 %vm285_vm2, %v273_v17 }
  0x27   : > { %749 = vmatpush3.bf16.msra.mxu0 %v748_v18  ;;  %732 = vmatprep.mubr.msk.f32.mxu0 %vm853_vm1, %v854_v7 }
  0x28   : > { %722 = vmatmul.mubr.msk.f32.vlgmr.msra.gmra.mrb[0].mxu1 %vm285_vm2, %v273_v17  ;;  %750 = vmatprep.subr.bf16.mxu0 %v852_v4 }
  0x2b   : > { %752 = vmatpush3.bf16.msra.mxu0 %v751_v21 }
  0x2e   : > { %733 = vmatmul.mubr.msk.f32.vlgmr.msra.gmra.mrb[2].mxu0 %vm285_vm2, %v273_v17 }
  0xf9   : > { %v355_v23 = vpop.f32.mrb[0].mxu0 }
  0xfa   : > { %v356_v26 = vadd.f32 %v664_v22, %v355_v23  ;;  %v712_v27 = vpop.f32.mrb[1].mxu0 }
  0xfb   : > { %v438_v28 = vpop.f32.mrb[0].mxu1 }
  0xfc   : > { %v526_v30 = vadd.f32 %v525_v24, %v356_v26  ;;  %v439_v31 = vadd.f32 %v671_v25, %v438_v28  ;;  %v723_v32 = vpop.f32.mrb[1].mxu1 }
  0xfe   : > { %v680_v33 = vmul.f32 -1.442695, %v526_v30  ;;  %v535_v34 = vadd.f32 %v681_v29, %v439_v31 }
 0x100   : > { %801 = vpow2.f32 %v680_v33  ;;  %v682_v35 = vmul.f32 -1.442695, %v535_v34 }
 0x101   : > { %v521_v36 = vpop.f32.mrb[2].mxu0 }
 0x102   : > { %v734_v37 = vpop.f32.mrb[3].mxu0  ;;  %803 = vpow2.f32 %v682_v35  ;;  %v522_v43 = vadd.f32 %v678_v41, %v521_v36 }
 0x10a   : > { %v802_v38 = vpop.eup %801 }
 0x10b   : > { %v530_v39 = vadd.f32 1.0, %v802_v38 }
 0x10c   : > { %v804_v40 = vpop.eup %803 }
 0x10d   : > { %805 = vrcp.f32 %v530_v39  ;;  %v539_v42 = vadd.f32 1.0, %v804_v40 }
 0x10f   : > { %807 = vrcp.f32 %v539_v42 }
 0x117   : > { %v806_v44 = vpop.eup %805 }
 0x118   : > { %v544_v46 = vmul.f32 %v806_v44, %v522_v43 }
 0x119   : > { %v808_v48 = vpop.eup %807 }
 0x11a   : > { %v545_v47 = vadd.f32 %v683_v45, %v544_v46  ;;  %v547_v49 = vsub.f32 1.0, %v808_v48  ;;  %v549_v51 = vmul.f32 %v808_v48, %v273_v17 }
 0x11c   : > { %809 = vtanh.f32 %v545_v47 }
 0x125   : > { %556 = sbr.rel (%p684_p8) target bundleno = 300 (0x12c), region = 40 }
 0x126   : > { %v810_v50 = vpop.eup %809 }
 0x127   : > { %v548_v52 = vmul.f32 %v810_v50, %v547_v49 }
 0x129   : > { %v550_v53 = vadd.f32 %v549_v51, %v548_v52 }
 0x12b   : > { %552 = vst.msk [vmem:[#allocation2] sm:$0xf] %vm551_vm3, %v550_v53  ;;  %557 = vst.msk [vmem:[%s917_s7] sm:$0xf] (!%p684_p8), %vm551_vm3, %v550_v53 }
 0x12c PF: > { %s13_s16 = sadd.s32 1, %s849_s16   ;;  %s972_s12 = smov %s841_s14 }
 0x12d   : > { %p10_p9 = scmp.ge.s32.totalorder %s13_s16, 18   ;;  %s973_s13 = smov %s845_s15 }
 0x12e   : > { %s974_s14 = smov %s977_s17  ;;  %s975_s15 = smov %s981_s18 }
 0x12f   :  { %12 = sbr.rel (!%p10_p9) target bundleno = 3 (0x3), region = 82 }

// kernel: vae_forward.10
= control target key start
LH: loop header
LB: loop body
LE: loop exit
PB: predicated region body
PF: predicated region fallthrough
CT: control target
= control target key end

     0   :  { %vm23_vm0 = vcmask 64512   ;;  %v114_v0 = vmov 0.0   ;;  %vm115_vm1 = vmmov 0   ;;  %vm97_vm2 = vcmask 125952   ;;  %s148_s1 = inlined_call_operand.vmem [shape: f32[8,16], index: 1, kind: input, shape index: {}]   ;;  %s149_s0 = inlined_call_operand.vmem [shape: f32[4,8], index: 0, kind: input, shape index: {}]   ;;  %s150_s2 = inlined_call_operand.vmem [shape: f32[1,16], index: 2, kind: input, shape index: {}]   ;;  %s151_s3 = inlined_call_operand.vmem [shape: f32[4,16], index: 3, kind: output, shape index: {}]  }
   0x1   :  { %107 = vmatprep.subr.mxu0 %v114_v0  ;;  %v15_v1 = vld [vmem:[%s148_s1] sm:$0xff]  ;;  %109 = vmatprep.mubr.msk.f32.mxu0 %vm115_vm1, %v114_v0 }
   0x2   :  { %v14_v2 = vld [vmem:[%s149_s0] sm:$0xf]  ;;  %108 = vmatpush3.msra.mxu0 %v15_v1 }
   0x3   :  { %110 = vmatmul.mubr.msk.f32.vlgmr.msra.gmra.mrb[0].mxu0 %vm23_vm0, %v14_v2  ;;  %v103_v3 = vld [vmem:[%s150_s2] ss:$0 sm:$0xff] }
  0xd6   :  { %v93_v4 = vpop.f32.mrb[0].mxu0 }
  0xd7   :  { %v94_v5 = vadd.f32 %v103_v3, %v93_v4  ;;  %v111_v6 = vpop.f32.mrb[1].mxu0 }
  0xd9   :  { %98 = vst.msk [vmem:[%s151_s3] sm:$0xf] %vm97_vm2, %v94_v5 }

// kernel: vae_forward.11
= control target key start
LH: loop header
LB: loop body
LE: loop exit
PB: predicated region body
PF: predicated region fallthrough
CT: control target
= control target key end

     0   :  { %vm27_vm0 = vcmask 130048   ;;  %vm125_vm1 = vcmask 785408   ;;  %s214_s1 = inlined_call_operand.vmem [shape: f32[16,96], index: 1, kind: input, shape index: {}]   ;;  %s215_s0 = inlined_call_operand.vmem [shape: f32[32,16], index: 0, kind: input, shape index: {}]   ;;  %s216_s2 = inlined_call_operand.vmem [shape: f32[1,96], index: 2, kind: input, shape index: {}]   ;;  %s217_s3 = inlined_call_operand.vmem [shape: f32[32,96], index: 3, kind: output, shape index: {}]  }
   0x1   :  { %v18_v0 = vld [vmem:[%s214_s1] sm:$0xff]  ;;  %v19_v1 = vld [vmem:[%s214_s1 + $0x8] sm:$0xff]  ;;  %v16_v4 = vld [vmem:[%s215_s0 + $0x10] sm:$0xff] }
   0x2   :  { %v14_v2 = vld [vmem:[%s215_s0] sm:$0xff]  ;;  %v155_v3 = vpack.c.bf16 %v19_v1, %v18_v0  ;;  %152 = vmatprep.mubr.msk.f32.mxu1 %vm27_vm0, %v16_v4  ;;  %v15_v5 = vld [vmem:[%s215_s0 + $0x8] sm:$0xff]  ;;  %v17_v6 = vld [vmem:[%s215_s0 + $0x18] sm:$0xff] }
   0x3   :  { %149 = vmatprep.mubr.msk.f32.mxu0 %vm27_vm0, %v14_v2  ;;  %v134_v7 = vld [vmem:[%s216_s2] ss:$0 sm:$0xff] }
   0x4   :  { %156 = vmatprep.subr.bf16.mxu0 %v155_v3  ;;  %159 = vmatprep.subr.bf16.mxu1 %v155_v3 }
   0x5   :  { %158 = vmatpush3.bf16.msra.mxu0 %v155_v3  ;;  %160 = vmatpush3.bf16.msra.mxu1 %v155_v3 }
   0x8   :  { %150 = vmatmul.mubr.msk.f32.vlgmr.msra.gmra.mrb[0].mxu0 %vm27_vm0, %v15_v5  ;;  %153 = vmatmul.mubr.msk.f32.vlgmr.msra.gmra.mrb[0].mxu1 %vm27_vm0, %v17_v6 }
  0xdb   :  { %v151_v8 = vpop.f32.mrb[0].mxu0  ;;  %v154_v9 = vpop.f32.mrb[0].mxu1 }
  0xdc   :  { %v112_v10 = vadd.f32 %v151_v8, %v134_v7  ;;  %v122_v11 = vadd.f32 %v154_v9, %v134_v7  ;;  %v106_v12 = vpop.f32.mrb[1].mxu0  ;;  %v116_v13 = vpop.f32.mrb[1].mxu1 }
  0xdd   :  { %v107_v14 = vadd.f32 %v134_v7, %v106_v12  ;;  %v117_v15 = vadd.f32 %v134_v7, %v116_v13 }
  0xde   :  { %127 = vst.msk [vmem:[%s217_s3 + $0x8] sm:$0xff] %vm125_vm1, %v112_v10  ;;  %129 = vst.msk [vmem:[%s217_s3 + $0x18] sm:$0xff] %vm125_vm1, %v122_v11 }
  0xdf   :  { %126 = vst.msk [vmem:[%s217_s3] sm:$0xff] %vm125_vm1, %v107_v14  ;;  %128 = vst.msk [vmem:[%s217_s3 + $0x10] sm:$0xff] %vm125_vm1, %v117_v15 }

// kernel: vae_forward.13
= control target key start
LH: loop header
LB: loop body
LE: loop exit
PB: predicated region body
PF: predicated region fallthrough
CT: control target
= control target key end

     0   :  { %vm30_vm0 = vcmask 261120   ;;  %s284_s0 = inlined_call_operand.vmem [shape: f32[32,32], index: 0, kind: input, shape index: {}]   ;;  %s285_s1 = inlined_call_operand.vmem [shape: f32[32,32], index: 1, kind: input, shape index: {}]   ;;  %s286_s2 = inlined_call_operand.vmem [shape: f32[1,32], index: 2, kind: input, shape index: {}]   ;;  %s287_s3 = inlined_call_operand.hbm [shape: f32[32,32], index: 3, kind: output, shape index: {}]  }
   0x1   :  { %v19_v0 = vld [vmem:[%s285_s1] sm:$0xff]  ;;  %v20_v1 = vld [vmem:[%s285_s1 + $0x8] sm:$0xff]  ;;  %v21_v2 = vld [vmem:[%s285_s1 + $0x10] sm:$0xff] }
   0x2   :  { %v175_v3 = vpack.c.bf16 %v20_v1, %v19_v0  ;;  %v22_v4 = vld [vmem:[%s285_s1 + $0x18] sm:$0xff]  ;;  %v15_v5 = vld [vmem:[%s284_s0] sm:$0xff]  ;;  %v17_v6 = vld [vmem:[%s284_s0 + $0x10] sm:$0xff] }
   0x3   :  { %v179_v7 = vpack.c.bf16 %v22_v4, %v21_v2  ;;  %169 = vmatprep.mubr.msk.f32.mxu0 %vm30_vm0, %v15_v5  ;;  %172 = vmatprep.mubr.msk.f32.mxu1 %vm30_vm0, %v17_v6 }
   0x4   :  { %8 = vsyncpa [#allocation3], 0  ;;  %176 = vmatprep.subr.bf16.mxu0 %v175_v3  ;;  %183 = vmatprep.subr.bf16.mxu1 %v175_v3  ;;  %v16_v8 = vld [vmem:[%s284_s0 + $0x8] sm:$0xff]  ;;  %v18_v9 = vld [vmem:[%s284_s0 + $0x18] sm:$0xff]  ;;  %s214_s29 = smov [#allocation2]  }
   0x5   :  { %178 = vmatpush3.bf16.msra.mxu0 %v175_v3  ;;  %185 = vmatpush3.bf16.msra.mxu1 %v175_v3  ;;  %v148_v10 = vld [vmem:[%s286_s2] ss:$0 sm:$0xff]  ;;  %s137_s30 = sshll.u32 %s214_s29, 4  ;;  %s138_s30 = int_to_ptr.vmem [resolvable:$true] %s137_s30 }
   0x6   :  { %180 = vmatprep.subr.bf16.mxu0 %v179_v7  ;;  %184 = vmatprep.subr.bf16.mxu1 %v179_v7  ;;  %s190_s0 = scalar_lea.vmem %s138_s30, 512  ;;  %p195_p1 = scmp.lt.s32.totalorder %s138_s30, %s138_s30 }
   0x7   :  { %p191_p0 = scmp.ne.s32.totalorder %s138_s30, %s190_s0  ;;  %p196_p2 = scmp.lt.s32.totalorder %s190_s0, %s190_s0 }
   0x9   :  { %182 = vmatpush3.bf16.msra.mxu0 %v179_v7  ;;  %186 = vmatpush3.bf16.msra.mxu1 %v179_v7  ;;  %p197_p3 = por %p196_p2, %p195_p1 }
   0xb   :  { %p198_p4 = pnand %p197_p3, %p191_p0 }
   0xc   :  { %170 = vmatmul.mubr.msk.f32.vlgmr.msra.gmra.mrb[0].mxu0 %vm30_vm0, %v16_v8  ;;  %173 = vmatmul.mubr.msk.f32.vlgmr.msra.gmra.mrb[0].mxu1 %vm30_vm0, %v18_v9 }
  0xdf   :  { %v171_v11 = vpop.f32.mrb[0].mxu0  ;;  %v174_v12 = vpop.f32.mrb[0].mxu1 }
  0xe0   :  { %v115_v13 = vadd.f32 %v171_v11, %v148_v10  ;;  %v125_v14 = vadd.f32 %v174_v12, %v148_v10  ;;  %v109_v15 = vpop.f32.mrb[1].mxu0  ;;  %v119_v16 = vpop.f32.mrb[1].mxu1 }
  0xe1   :  { %v110_v17 = vadd.f32 %v148_v10, %v109_v15  ;;  %v120_v18 = vadd.f32 %v148_v10, %v119_v16 }
  0xe2   :  { %129 = vst.msk [vmem:[#allocation2 + $0x8] sm:$0xff] %vm30_vm0, %v115_v13  ;;  %131 = vst.msk [vmem:[#allocation2 + $0x18] sm:$0xff] %vm30_vm0, %v125_v14 }
  0xe3   :  { %128 = vst.msk [vmem:[#allocation2] sm:$0xff] %vm30_vm0, %v110_v17  ;;  %130 = vst.msk [vmem:[#allocation2 + $0x10] sm:$0xff] %vm30_vm0, %v120_v18 }
  0xe4   :  { %201 = shalt.err (!%p198_p4)
}
  0xe5   :  { %s202_s5 = scalar_lea.hbm %s287_s3, 512 }
  0xe6   :  { %p203_p5 = scmp.ne.s32.totalorder %s287_s3, %s202_s5  ;;  %p206_p6 = scmp.lt.u32.totalorder %s202_s5, %s287_s3 }
  0xe8   :  { %p208_p7 = pnand %p206_p6, %p203_p5 }
  0xea   :  { %211 = shalt.err (!%p208_p7)
}
  0xeb   :  { %s215_s10 = smov 128   ;;  %s216_s11 = smov 8  }
  0xec   :  { %143 = dma.vmem_to_hbm [thread:$0]  %s138_s30, 512, %s287_s3, [#allocation3], %s215_s10, %s215_s10, %s216_s11  }
  0xed   :  { %212 = dma.done.wait [#allocation3], 512  }
  0xee   :  { %213 = vsyncadd [#allocation3], 4294966784 }
  0xef   :  { %147 = vsyncpa [#allocation3], 1 }

// kernel: vae_forward.12
= control target key start
LH: loop header
LB: loop body
LE: loop exit
PB: predicated region body
PF: predicated region fallthrough
CT: control target
= control target key end

     0   :  { %s625_s12 = smov 0   ;;  %s701_s0 = inlined_call_operand.vmem [shape: f32[8,3,4,32], index: 0, kind: input, shape index: {}]   ;;  %s702_s1 = inlined_call_operand.vmem [shape: f32[3,32,32], index: 1, kind: input, shape index: {}]   ;;  %s703_s2 = inlined_call_operand.vmem [shape: f32[3,1,32], index: 2, kind: input, shape index: {}]   ;;  %s704_s3 = inlined_call_operand.vmem [shape: f32[8,4,32], index: 3, kind: output, shape index: {}]  }
   0x1 LB: > { %s631_s13 = sadd.s32 4294967295, %s599_s12   ;;  %p478_p0 = scmp.ge.s32.totalorder %s599_s12, 1  ;;  %s599_s12 = sphi %s625_s12, %s13_s12  }
   0x2   : > { %p132_p1 = scmp.lt.s32.totalorder %s599_s12, 9 }
   0x4   : > { %p133_p2 = pnand %p478_p0, %p132_p1 }
   0x5   : > { %p151_p3 = scmp.lt.s32.totalorder (!%p133_p2), %s631_s13, 7  ;;  %p480_p4 = scmp.ne.s32.totalorder (!%p133_p2), %s631_s13, 0 }
   0x6   : > { %136 = sbr.rel (%p133_p2) target bundleno = 293 (0x125), region = 32 }
   0xd   : > { %s152_s14 = scalar_select %p151_p3, %s631_s13, 7 }
   0xe   : > { %159 = sbr.rel (%p480_p4) target bundleno = 21 (0x15), region = 36  ;;  %vm160_vm0 = vcmask (!%p480_p4), 257024   ;;  %v601_v0 = vmov (!%p480_p4), 0.0  }
   0xf   : > { %s570_s15 = smul.u32 12, %s152_s14  ;;  %161 = vst.msk [vmem:[#allocation2] sm:$0xf] (!%p480_p4), %vm160_vm0, %v601_v0 }
  0x11   : > { %s640_s18 = scalar_lea.vmem %s701_s0, %s570_s15 }
  0x15 PF: > { %v163_v1 = vld [vmem:[%s702_s1] sm:$0xff]  ;;  %v164_v2 = vld [vmem:[%s702_s1 + $0x8] sm:$0xff]  ;;  %v165_v3 = vld [vmem:[%s702_s1 + $0x10] sm:$0xff]  ;;  %v602_v4 = vmov 0.0|0.0   ;;  %vm603_vm1 = vmmov 0   ;;  %v604_v7 = vmov 0.0  }
  0x16   : > { %552 = vmatprep.subr.bf16.mxu0 %v602_v4  ;;  %v553_v5 = vpack.c.bf16 %v164_v2, %v163_v1  ;;  %v166_v6 = vld [vmem:[%s702_s1 + $0x18] sm:$0xff]  ;;  %527 = vmatprep.mubr.msk.f32.mxu0 %vm603_vm1, %v604_v7  ;;  %v483_v8 = vld [vmem:[%s702_s1 + $0x20] sm:$0xff]  ;;  %v484_v9 = vld [vmem:[%s702_s1 + $0x28] sm:$0xff]  ;;  %vm174_vm2 = vcmask 261120   ;;  %s501_s25 = sshll.u32 %s631_s13, 2  ;;  %vm440_vm3 = vcmask 257024  }
  0x17   : > { %558 = vmatprep.subr.bf16.mxu1 %v602_v4  ;;  %v485_v10 = vld [vmem:[%s702_s1 + $0x30] sm:$0xff]  ;;  %v486_v11 = vld [vmem:[%s702_s1 + $0x38] sm:$0xff]  ;;  %538 = vmatprep.mubr.msk.f32.mxu1 %vm603_vm1, %v604_v7  ;;  %v556_v12 = vpack.c.bf16 %v166_v6, %v165_v3  ;;  %v559_v13 = vpack.c.bf16 %v484_v9, %v483_v8  ;;  %v490_v14 = vld [vmem:[%s702_s1 + $0x40] sm:$0xff]  ;;  %s443_s28 = scalar_lea.vmem %s704_s3, %s501_s25 }
  0x18   : > { %554 = vmatpush3.bf16.msra.mxu0 %v553_v5  ;;  %v491_v15 = vld [vmem:[%s702_s1 + $0x48] sm:$0xff]  ;;  %v562_v16 = vpack.c.bf16 %v486_v11, %v485_v10  ;;  %v162_v17 = vld [vmem:[#allocation2] sm:$0xf]  ;;  %v492_v19 = vld [vmem:[%s702_s1 + $0x50] sm:$0xff] }
  0x19   : > { %555 = vmatprep.subr.bf16.mxu0 %v602_v4  ;;  %560 = vmatpush3.bf16.msra.mxu1 %v559_v13  ;;  %v565_v18 = vpack.c.bf16 %v491_v15, %v490_v14  ;;  %v493_v20 = vld [vmem:[%s702_s1 + $0x58] sm:$0xff]  ;;  %v481_v22 = vld [vmem:[%s703_s2] ss:$0 sm:$0xff]  ;;  %v488_v25 = vld [vmem:[%s703_s2 + $0x1] ss:$0 sm:$0xff] }
  0x1a   : > { %561 = vmatprep.subr.bf16.mxu1 %v602_v4  ;;  %v568_v21 = vpack.c.bf16 %v493_v20, %v492_v19  ;;  %v414_v24 = vld [vmem:[%s640_s18] sm:$0xf]  ;;  %v498_v29 = vld [vmem:[%s640_s18 + $0x4] sm:$0xf]  ;;  %v500_v45 = vld [vmem:[%s640_s18 + $0x8] sm:$0xf] }
  0x1b   : > { %v495_v41 = vld [vmem:[%s703_s2 + $0x2] ss:$0 sm:$0xff] }
  0x1c   : > { %557 = vmatpush3.bf16.msra.mxu0 %v556_v12 }
  0x1d   : > { %564 = vmatprep.subr.bf16.mxu0 %v602_v4  ;;  %563 = vmatpush3.bf16.msra.mxu1 %v562_v16 }
  0x1f   : > { %528 = vmatmul.mubr.msk.f32.vlgmr.msra.gmra.mrb[0].mxu0 %vm174_vm2, %v162_v17 }
  0x20   : > { %566 = vmatpush3.bf16.msra.mxu0 %v565_v18  ;;  %549 = vmatprep.mubr.msk.f32.mxu0 %vm603_vm1, %v604_v7 }
  0x21   : > { %539 = vmatmul.mubr.msk.f32.vlgmr.msra.gmra.mrb[0].mxu1 %vm174_vm2, %v162_v17  ;;  %567 = vmatprep.subr.bf16.mxu0 %v602_v4 }
  0x24   : > { %569 = vmatpush3.bf16.msra.mxu0 %v568_v21 }
  0x27   : > { %550 = vmatmul.mubr.msk.f32.vlgmr.msra.gmra.mrb[2].mxu0 %vm174_vm2, %v162_v17 }
  0xf2   : > { %v244_v23 = vpop.f32.mrb[0].mxu0 }
  0xf3   : > { %v245_v26 = vadd.f32 %v481_v22, %v244_v23  ;;  %v529_v27 = vpop.f32.mrb[1].mxu0 }
  0xf4   : > { %v327_v28 = vpop.f32.mrb[0].mxu1 }
  0xf5   : > { %v415_v30 = vadd.f32 %v414_v24, %v245_v26  ;;  %v328_v31 = vadd.f32 %v488_v25, %v327_v28  ;;  %v540_v32 = vpop.f32.mrb[1].mxu1 }
  0xf7   : > { %v497_v33 = vmul.f32 -1.442695, %v415_v30  ;;  %v424_v34 = vadd.f32 %v498_v29, %v328_v31 }
  0xf9   : > { %583 = vpow2.f32 %v497_v33  ;;  %v499_v35 = vmul.f32 -1.442695, %v424_v34 }
  0xfa   : > { %v410_v36 = vpop.f32.mrb[2].mxu0 }
  0xfb   : > { %v551_v37 = vpop.f32.mrb[3].mxu0  ;;  %585 = vpow2.f32 %v499_v35  ;;  %v411_v43 = vadd.f32 %v495_v41, %v410_v36 }
 0x103   : > { %v584_v38 = vpop.eup %583 }
 0x104   : > { %v419_v39 = vadd.f32 1.0, %v584_v38 }
 0x105   : > { %v586_v40 = vpop.eup %585 }
 0x106   : > { %587 = vrcp.f32 %v419_v39  ;;  %v428_v42 = vadd.f32 1.0, %v586_v40 }
 0x108   : > { %589 = vrcp.f32 %v428_v42 }
 0x110   : > { %v588_v44 = vpop.eup %587 }
 0x111   : > { %v433_v46 = vmul.f32 %v588_v44, %v411_v43 }
 0x112   : > { %v590_v48 = vpop.eup %589 }
 0x113   : > { %v434_v47 = vadd.f32 %v500_v45, %v433_v46  ;;  %v436_v49 = vsub.f32 1.0, %v590_v48  ;;  %v438_v51 = vmul.f32 %v590_v48, %v162_v17 }
 0x115   : > { %591 = vtanh.f32 %v434_v47 }
 0x11f   : > { %v592_v50 = vpop.eup %591 }
 0x120   : > { %v437_v52 = vmul.f32 %v592_v50, %v436_v49 }
 0x122   : > { %v439_v53 = vadd.f32 %v438_v51, %v437_v52 }
 0x124   : > { %441 = vst.msk [vmem:[#allocation2] sm:$0xf] %vm440_vm3, %v439_v53  ;;  %444 = vst.msk [vmem:[%s443_s28] sm:$0xf] %vm440_vm3, %v439_v53 }
 0x125 PF: > { %s13_s12 = sadd.s32 1, %s599_s12  }
 0x126   : > { %p10_p5 = scmp.ge.s32.totalorder %s13_s12, 10  }
 0x128   :  { %12 = sbr.rel (!%p10_p5) target bundleno = 1 (0x1), region = 69 }

</bundles_post_ra>
